<compile_context>
chip_gen: v6e
topology: v6e:2x2x1
jax: 0.10.0
libtpu: 0.0.40
codegen_flags: <defaults>
</compile_context>

<pallas_src>
import jax
import jax.numpy as jnp
from jax.experimental import pallas as pl
from jax.experimental.pallas import tpu as pltpu

STATE_DIM = 9
ACTION_DIM = 1
HIDDEN_DIM = 128

STATE_PAD = 16                       # sublane-aligned state width
FUSED = 2 * HIDDEN_DIM               # 256 = actor||critic fused width
HEAD_W = 128                         # compacted, lane-dense head/output width
W_ROWS = STATE_PAD + FUSED + FUSED   # 528 rows in the packed weight slab
MAX_BATCH_TILE = 1024                # batch tile for large rollout batches


def _round_up(x, m):
    return ((x + m - 1) // m) * m


def _choose_batch_tile(B):
    """Pick (batch_tile, padded_batch). >=2 grid steps for large batches (v7x)."""
    if B <= MAX_BATCH_TILE:
        tb = _round_up(max(B, 8), 8)
        return tb, tb
    n_tiles = max(2, -(-B // MAX_BATCH_TILE))
    tb = _round_up(-(-B // n_tiles), 8)
    return tb, _round_up(B, tb)


def _vmem_limit_bytes(tb):
    """Double-buffered pipeline footprint + in-kernel temporaries, 2x headroom."""
    pipe = 2 * (tb * STATE_PAD * 4          # f32 state tile
                + W_ROWS * FUSED * 2        # bf16 weight slab
                + 8 * FUSED * 4             # f32 bias slab
                + tb * HEAD_W * 4)          # f32 output tile
    temps = tb * FUSED * (4 + 2) * 2 + tb * HEAD_W * 4 * 4
    return int(max(16 << 20, min(48 << 20, 2 * (pipe + temps))))


def _is_v5e():
    try:
        kind = jax.devices()[0].device_kind.lower()
    except Exception:
        return False
    return ("v5e" in kind) or ("v5 lite" in kind) or ("v5lite" in kind)


def _epilogue(y, o_ref):
    # col 0 = actor mean (tanh), col 1 = critic value (identity); cols 2..127
    # are exact zeros from the packing (tanh(0)=0, harmless either way).
    col = jax.lax.broadcasted_iota(jnp.int32, y.shape, 1)
    o_ref[...] = jnp.where(col == 0, jnp.tanh(y), y)


def ppo_fused_kernel(s_ref, w_ref, b_ref, o_ref):
    # s_ref: (TB, 16) f32   w_ref: (528, 256) bf16   b_ref: (8, 256) f32
    # o_ref: (TB, 128) f32
    x = s_ref[...].astype(jnp.bfloat16)

    w1 = w_ref[0:STATE_PAD, :]                          # (16, 256)
    b1 = b_ref[0:1, :]
    h = jnp.dot(x, w1, preferred_element_type=jnp.float32) + b1
    h = jnp.maximum(h, 0.0).astype(jnp.bfloat16)        # (TB, 256)

    w2 = w_ref[STATE_PAD:STATE_PAD + FUSED, :]          # (256, 256) block-diag
    b2 = b_ref[1:2, :]
    g = jnp.dot(h, w2, preferred_element_type=jnp.float32) + b2
    g = jnp.maximum(g, 0.0).astype(jnp.bfloat16)        # (TB, 256)

    w3 = w_ref[STATE_PAD + FUSED:W_ROWS, 0:HEAD_W]      # (256, 128) packed heads
    b3 = b_ref[2:3, 0:HEAD_W]
    y = jnp.dot(g, w3, preferred_element_type=jnp.float32) + b3   # (TB, 128)

    _epilogue(y, o_ref)


def ppo_split_kernel(s_ref, w_ref, b_ref, o_ref):
    # v5e variant: layer 2 / head as exact 128-wide dots (MXU is 4x128x128).
    H = HIDDEN_DIM
    x = s_ref[...].astype(jnp.bfloat16)

    w1 = w_ref[0:STATE_PAD, :]
    b1 = b_ref[0:1, :]
    h = jnp.dot(x, w1, preferred_element_type=jnp.float32) + b1
    h = jnp.maximum(h, 0.0).astype(jnp.bfloat16)        # (TB, 256)
    h_a = h[:, :H]
    h_c = h[:, H:]

    aw2 = w_ref[STATE_PAD:STATE_PAD + H, 0:H]           # (128, 128)
    cw2 = w_ref[STATE_PAD + H:STATE_PAD + FUSED, H:FUSED]
    b2 = b_ref[1:2, :]
    g_a = jnp.dot(h_a, aw2, preferred_element_type=jnp.float32) + b2[:, :H]
    g_c = jnp.dot(h_c, cw2, preferred_element_type=jnp.float32) + b2[:, H:]
    g_a = jnp.maximum(g_a, 0.0).astype(jnp.bfloat16)
    g_c = jnp.maximum(g_c, 0.0).astype(jnp.bfloat16)

    aw3 = w_ref[STATE_PAD + FUSED:STATE_PAD + FUSED + H, 0:HEAD_W]   # (128, 128)
    cw3 = w_ref[STATE_PAD + FUSED + H:W_ROWS, 0:HEAD_W]
    b3 = b_ref[2:3, 0:HEAD_W]
    y = (jnp.dot(g_a, aw3, preferred_element_type=jnp.float32)
         + jnp.dot(g_c, cw3, preferred_element_type=jnp.float32) + b3)

    _epilogue(y, o_ref)


def ppo_agent_forward(state, packed):
    """state: (B, STATE_DIM) f32. Returns (action_mean (B,1), value (B,1))."""
    w_slab, b_slab = packed
    B = state.shape[0]

    tb, b_pad = _choose_batch_tile(B)
    x = jnp.pad(state.astype(jnp.float32),
                ((0, b_pad - B), (0, STATE_PAD - STATE_DIM)))

    kernel = ppo_split_kernel if _is_v5e() else ppo_fused_kernel

    out = pl.pallas_call(
        kernel,
        out_shape=jax.ShapeDtypeStruct((b_pad, HEAD_W), jnp.float32),
        grid_spec=pltpu.PrefetchScalarGridSpec(
            num_scalar_prefetch=0,
            grid=(b_pad // tb,),
            in_specs=[
                pl.BlockSpec((tb, STATE_PAD), lambda i: (i, 0)),
                pl.BlockSpec((W_ROWS, FUSED), lambda i: (0, 0)),   # resident weights
                pl.BlockSpec((8, FUSED), lambda i: (0, 0)),        # resident biases
            ],
            out_specs=pl.BlockSpec((tb, HEAD_W), lambda i: (i, 0)),
        ),
        compiler_params=pltpu.CompilerParams(
            dimension_semantics=("parallel",),         # batch shards across v7x's 2 TCs
            vmem_limit_bytes=_vmem_limit_bytes(tb),
        ),
    )(x, w_slab, b_slab)

    head = out[:B, :2]                     # single slice of the lane-dense output
    action_mean = head[:, 0:ACTION_DIM]
    value = head[:, 1:2]
    return action_mean, value


def init_params(key):
    """Deterministic init mirroring PyTorch nn.Linear default (U[-1/sqrt(fan_in), +])."""
    ks = jax.random.split(key, 12)

    def linear(kw, kb, fan_in, fan_out):
        bound = 1.0 / jnp.sqrt(jnp.float32(fan_in))
        w = jax.random.uniform(kw, (fan_in, fan_out), jnp.float32, -bound, bound)
        b = jax.random.uniform(kb, (1, fan_out), jnp.float32, -bound, bound)
        return w, b

    aw1, ab1 = linear(ks[0], ks[1], STATE_DIM, HIDDEN_DIM)
    aw2, ab2 = linear(ks[2], ks[3], HIDDEN_DIM, HIDDEN_DIM)
    aw3, ab3 = linear(ks[4], ks[5], HIDDEN_DIM, ACTION_DIM)
    cw1, cb1 = linear(ks[6], ks[7], STATE_DIM, HIDDEN_DIM)
    cw2, cb2 = linear(ks[8], ks[9], HIDDEN_DIM, HIDDEN_DIM)
    cw3, cb3 = linear(ks[10], ks[11], HIDDEN_DIM, 1)
    # NOTE: self.action_std (ones(1, action_dim)*0.7) is only used for sampling
    # in select_action, not in forward(); omitted from the kernel.
    return (aw1, ab1, aw2, ab2, aw3, ab3,
            cw1, cb1, cw2, cb2, cw3, cb3)


def pack_params(params):
    """Host-side fusion of the 12 PyTorch-style tensors into 2 lane-dense slabs."""
    (aw1, ab1, aw2, ab2, aw3, ab3,
     cw1, cb1, cw2, cb2, cw3, cb3) = params
    H = HIDDEN_DIM

    # Layer 1: (16, 256) = [actor_W1 | critic_W1], rows 9..15 zero (state pad).
    w1 = jnp.zeros((STATE_PAD, FUSED), jnp.float32)
    w1 = w1.at[:STATE_DIM, :H].set(aw1).at[:STATE_DIM, H:].set(cw1)

    # Layer 2: exact block-diagonal (actor/critic must not mix).
    w2 = jnp.zeros((FUSED, FUSED), jnp.float32)
    w2 = w2.at[:H, :H].set(aw2).at[H:, H:].set(cw2)

    # Heads: col 0 = actor head over actor half, col 1 = critic head over critic
    # half. Padded to 256 lanes so the slab is rectangular; the kernel only
    # reads lanes 0..127.
    w3 = jnp.zeros((FUSED, FUSED), jnp.float32)
    w3 = w3.at[:H, 0:1].set(aw3).at[H:, 1:2].set(cw3)

    w_slab = jnp.concatenate([w1, w2, w3], axis=0).astype(jnp.bfloat16)  # (528, 256)

    b_slab = jnp.zeros((8, FUSED), jnp.float32)
    b_slab = b_slab.at[0, :H].set(ab1[0]).at[0, H:].set(cb1[0])
    b_slab = b_slab.at[1, :H].set(ab2[0]).at[1, H:].set(cb2[0])
    b_slab = b_slab.at[2, 0].set(ab3[0, 0]).at[2, 1].set(cb3[0, 0])
    return w_slab, b_slab


def reference_forward(state, params):
    (aw1, ab1, aw2, ab2, aw3, ab3,
     cw1, cb1, cw2, cb2, cw3, cb3) = params
    hp = jax.lax.Precision.HIGHEST
    h = jnp.maximum(jnp.dot(state, aw1, precision=hp) + ab1, 0.0)
    h = jnp.maximum(jnp.dot(h, aw2, precision=hp) + ab2, 0.0)
    mean = jnp.tanh(jnp.dot(h, aw3, precision=hp) + ab3)
    g = jnp.maximum(jnp.dot(state, cw1, precision=hp) + cb1, 0.0)
    g = jnp.maximum(jnp.dot(g, cw2, precision=hp) + cb2, 0.0)
    val = jnp.dot(g, cw3, precision=hp) + cb3
    return mean, val


if __name__ == "__main__":
    key = jax.random.PRNGKey(0)
    k_param, k_state = jax.random.split(key)

    B = 8  # small batch of environment states
    params = init_params(k_param)
    packed = pack_params(params)
    state = jax.random.normal(k_state, (B, STATE_DIM), jnp.float32)

    action_mean, value = ppo_agent_forward(state, packed)
    action_mean = jax.block_until_ready(action_mean)
    value = jax.block_until_ready(value)

    ref_mean, ref_val = reference_forward(state, params)
    assert action_mean.shape == (B, ACTION_DIM)
    assert value.shape == (B, 1)
    # bf16 weights/activations (f32 accumulation) vs. f32 reference -> ~1e-2 tolerance.
    assert jnp.allclose(action_mean, ref_mean, atol=2e-2, rtol=2e-2)
    assert jnp.allclose(value, ref_val, atol=2e-2, rtol=2e-2)

    # TODO(synk): select_action's Normal sampling / clamping / apply_constraints
    # and the Environment/Memory classes are host-side control flow (pandas,
    # prints, holiday lookups), not part of forward(); left on the host.
    print("KERNEL_OK")
</pallas_src>

<mosaic_0001>
module attributes {stable_mosaic.version = 11 : i64} {
  func.func @ppo_fused_kernel(%arg0: i32, %arg1: memref<8x16xf32, #tpu.memory_space<vmem>>, %arg2: memref<528x256xbf16, #tpu.memory_space<vmem>>, %arg3: memref<8x256xf32, #tpu.memory_space<vmem>>, %arg4: memref<8x128xf32, #tpu.memory_space<vmem>>) attributes {dimension_semantics = [#tpu.dimension_semantics<parallel>], iteration_bounds = array<i64: 1>, scalar_prefetch = 0 : i64, scratch_operands = 0 : i64, tpu.core_type = #tpu.core_type<tc>, window_params = [{transform_indices = @transform_0, window_bounds = array<i64: 8, 16>}, {pipeline_mode = #tpu.pipeline_mode<synchronous>, transform_indices = @transform_1, window_bounds = array<i64: 528, 256>}, {pipeline_mode = #tpu.pipeline_mode<synchronous>, transform_indices = @transform_2, window_bounds = array<i64: 8, 256>}, {transform_indices = @transform_3, window_bounds = array<i64: 8, 128>}]} {
    %c0 = arith.constant 0 : index
    %c0_0 = arith.constant 0 : index
    %0 = vector.load %arg1[%c0, %c0_0] : memref<8x16xf32, #tpu.memory_space<vmem>>, vector<8x16xf32>
    %1 = arith.truncf %0 : vector<8x16xf32> to vector<8x16xbf16>
    %c0_1 = arith.constant 0 : index
    %c0_2 = arith.constant 0 : index
    %2 = vector.load %arg2[%c0_1, %c0_2] : memref<528x256xbf16, #tpu.memory_space<vmem>>, vector<16x256xbf16>
    %c0_3 = arith.constant 0 : index
    %c0_4 = arith.constant 0 : index
    %3 = vector.load %arg3[%c0_3, %c0_4] : memref<8x256xf32, #tpu.memory_space<vmem>>, vector<1x256xf32>
    %cst = arith.constant dense<0.000000e+00> : vector<8x256xf32>
    %4 = tpu.matmul %1, %2, %cst {dimension_numbers = #tpu.dot_dimension_numbers<[1], [0], [0], [1], [0, 0, 1, 1], [], []>} : vector<8x16xbf16>, vector<16x256xbf16>, vector<8x256xf32> -> vector<8x256xf32>
    %5 = vector.broadcast %3 : vector<1x256xf32> to vector<8x256xf32>
    %6 = arith.addf %4, %5 : vector<8x256xf32>
    %cst_5 = arith.constant 0.000000e+00 : f32
    %7 = vector.broadcast %cst_5 : f32 to vector<8x256xf32>
    %8 = arith.maximumf %6, %7 : vector<8x256xf32>
    %9 = arith.truncf %8 : vector<8x256xf32> to vector<8x256xbf16>
    %c16 = arith.constant 16 : index
    %c0_6 = arith.constant 0 : index
    %10 = vector.load %arg2[%c16, %c0_6] : memref<528x256xbf16, #tpu.memory_space<vmem>>, vector<256x256xbf16>
    %c1 = arith.constant 1 : index
    %c0_7 = arith.constant 0 : index
    %11 = vector.load %arg3[%c1, %c0_7] : memref<8x256xf32, #tpu.memory_space<vmem>>, vector<1x256xf32>
    %cst_8 = arith.constant dense<0.000000e+00> : vector<8x256xf32>
    %12 = tpu.matmul %9, %10, %cst_8 {dimension_numbers = #tpu.dot_dimension_numbers<[1], [0], [0], [1], [0, 0, 1, 1], [], []>} : vector<8x256xbf16>, vector<256x256xbf16>, vector<8x256xf32> -> vector<8x256xf32>
    %13 = vector.broadcast %11 : vector<1x256xf32> to vector<8x256xf32>
    %14 = arith.addf %12, %13 : vector<8x256xf32>
    %cst_9 = arith.constant 0.000000e+00 : f32
    %15 = vector.broadcast %cst_9 : f32 to vector<8x256xf32>
    %16 = arith.maximumf %14, %15 : vector<8x256xf32>
    %17 = arith.truncf %16 : vector<8x256xf32> to vector<8x256xbf16>
    %c272 = arith.constant 272 : index
    %c0_10 = arith.constant 0 : index
    %18 = vector.load %arg2[%c272, %c0_10] : memref<528x256xbf16, #tpu.memory_space<vmem>>, vector<256x128xbf16>
    %c2 = arith.constant 2 : index
    %c0_11 = arith.constant 0 : index
    %19 = vector.load %arg3[%c2, %c0_11] : memref<8x256xf32, #tpu.memory_space<vmem>>, vector<1x128xf32>
    %cst_12 = arith.constant dense<0.000000e+00> : vector<8x128xf32>
    %20 = tpu.matmul %17, %18, %cst_12 {dimension_numbers = #tpu.dot_dimension_numbers<[1], [0], [0], [1], [0, 0, 1, 1], [], []>} : vector<8x256xbf16>, vector<256x128xbf16>, vector<8x128xf32> -> vector<8x128xf32>
    %21 = vector.broadcast %19 : vector<1x128xf32> to vector<8x128xf32>
    %22 = arith.addf %20, %21 : vector<8x128xf32>
    %23 = tpu.iota {dimensions = array<i32: 1>} : vector<8x128xi32>
    %c0_i32 = arith.constant 0 : i32
    %24 = vector.broadcast %c0_i32 : i32 to vector<8x128xi32>
    %25 = arith.cmpi eq, %23, %24 : vector<8x128xi32>
    %26 = math.tanh %22 : vector<8x128xf32>
    %27 = arith.select %25, %26, %22 : vector<8x128xi1>, vector<8x128xf32>
    %c0_13 = arith.constant 0 : index
    %c0_14 = arith.constant 0 : index
    %28 = vector.load %arg4[%c0_13, %c0_14] : memref<8x128xf32, #tpu.memory_space<vmem>>, vector<8x128xf32>
    tpu.vector_store %arg4[%c0_13, %c0_14], %27 {strides = array<i32>} : memref<8x128xf32, #tpu.memory_space<vmem>>, vector<8x128xf32>,
    return
  }
  func.func @transform_0(%arg0: i32) -> (i32, i32) {
    %c0_i32 = arith.constant 0 : i32
    %c0_i32_0 = arith.constant 0 : i32
    return %arg0, %c0_i32 : i32, i32
  }
  func.func @transform_1(%arg0: i32) -> (i32, i32) {
    %c0_i32 = arith.constant 0 : i32
    %c0_i32_0 = arith.constant 0 : i32
    %c0_i32_1 = arith.constant 0 : i32
    return %c0_i32, %c0_i32_0 : i32, i32
  }
  func.func @transform_2(%arg0: i32) -> (i32, i32) {
    %c0_i32 = arith.constant 0 : i32
    %c0_i32_0 = arith.constant 0 : i32
    %c0_i32_1 = arith.constant 0 : i32
    return %c0_i32, %c0_i32_0 : i32, i32
  }
  func.func @transform_3(%arg0: i32) -> (i32, i32) {
    %c0_i32 = arith.constant 0 : i32
    %c0_i32_0 = arith.constant 0 : i32
    return %arg0, %c0_i32 : i32, i32
  }
}

</mosaic_0001>

<bundles_post_ra>
// kernel: tpu_custom_call.1
= control target key start
LH: loop header
LB: loop body
LE: loop exit
PB: predicated region body
PF: predicated region fallthrough
CT: control target
= control target key end

     0   :  { %8 = vsyncpa [#allocation3], 0  ;;  %s843_s0 = inlined_call_operand.hbm [shape: f32[8,16], index: 0, kind: input, shape index: {}]   ;;  %s844_s1 = inlined_call_operand.hbm [shape: bf16[528,256], index: 1, kind: input, shape index: {}]   ;;  %s845_s2 = inlined_call_operand.hbm [shape: f32[8,256], index: 2, kind: input, shape index: {}]   ;;  %s846_s3 = inlined_call_operand.hbm [shape: f32[8,128], index: 3, kind: output, shape index: {}]  }
   0x1   :  { %9 = vsyncpa [#allocation6], 0 }
   0x2   :  { %10 = vsyncpa [#allocation4], 0  ;;  %s804_s12 = smov [#allocation5]  }
   0x3   :  { %s26_s13 = sshll.u32 %s804_s12, 4  ;;  %s27_s13 = int_to_ptr.vmem [resolvable:$true] %s26_s13 }
   0x4   :  { %s726_s14 = scalar_lea.vmem %s27_s13, 8448  ;;  %p731_p1 = scmp.lt.s32.totalorder %s27_s13, %s27_s13 }
   0x5   :  { %p727_p0 = scmp.ne.s32.totalorder %s27_s13, %s726_s14  ;;  %p732_p2 = scmp.lt.s32.totalorder %s726_s14, %s726_s14 }
   0x7   :  { %p733_p3 = por %p732_p2, %p731_p1 }
   0x9   :  { %p734_p4 = pnand %p733_p3, %p727_p0 }
   0xb   :  { %737 = shalt.err (!%p734_p4)
}
   0xc   :  { %s805_s15 = smov 128   ;;  %s806_s16 = smov 8  }
   0xd   :  { %32 = dma.hbm_to_vmem [thread:$0]  %s844_s1, 8448, %s27_s13, [#allocation6], %s805_s15, %s805_s15, %s806_s16  }
   0xe   :  { %s807_s19 = smov [#allocation2]   ;;  %s808_s21 = smov [#allocation7]  }
   0xf   :  { %s17_s20 = sshll.u32 %s807_s19, 4  ;;  %s39_s22 = sshll.u32 %s808_s21, 4  ;;  %s18_s20 = int_to_ptr.vmem [resolvable:$true] %s17_s20  ;;  %s40_s22 = int_to_ptr.vmem [resolvable:$true] %s39_s22 }
  0x10   :  { %s746_s23 = scalar_lea.vmem %s18_s20, 128  ;;  %p751_p6 = scmp.lt.s32.totalorder %s18_s20, %s18_s20 }
  0x11   :  { %p747_p5 = scmp.ne.s32.totalorder %s18_s20, %s746_s23  ;;  %p752_p7 = scmp.lt.s32.totalorder %s746_s23, %s746_s23 }
  0x13   :  { %p753_p8 = por %p752_p7, %p751_p6 }
  0x15   :  { %p754_p9 = pnand %p753_p8, %p747_p5 }
  0x17   :  { %757 = shalt.err (!%p754_p9)
}
  0x18   :  { %20 = dma.hbm_to_vmem [thread:$0]  %s843_s0, 128, %s18_s20, [#allocation3]  }
  0x19   :  { %s766_s26 = scalar_lea.vmem %s40_s22, 256  ;;  %p771_p11 = scmp.lt.s32.totalorder %s40_s22, %s40_s22 }
  0x1a   :  { %p767_p10 = scmp.ne.s32.totalorder %s40_s22, %s766_s26  ;;  %p772_p12 = scmp.lt.s32.totalorder %s766_s26, %s766_s26 }
  0x1c   :  { %p773_p13 = por %p772_p12, %p771_p11 }
  0x1e   :  { %p774_p0 = pnand %p773_p13, %p767_p10 }
  0x20   :  { %777 = shalt.err (!%p774_p0)
}
  0x21   :  { %42 = dma.hbm_to_vmem [thread:$0]  %s845_s2, 256, %s40_s22, [#allocation6]  }
  0x22   :  { %798 = dma.done.wait [#allocation3], 128  }
  0x23   :  { %799 = vsyncadd [#allocation3], 4294967168 }
  0x24   :  { %800 = dma.done.wait [#allocation6], 8704  }
  0x25   :  { %801 = vsyncadd [#allocation6], 4294958592  ;;  %v809_v0 = vmov 0   ;;  %v649_v1 = vld [vmem:[#allocation5 + $0x4] ss:$8 sps:$4 sm:$0xff]   ;;  %v53_v3 = vld [vmem:[#allocation2] sm:$0xff]  ;;  %v59_v49 = vlaneseq }
  0x26   :  { %115 = vmatprep.mubr.bf16.mxu0 %v809_v0  ;;  %v651_v2 = vld [vmem:[#allocation5] ss:$8 sps:$4 sm:$0xff]   ;;  %97 = vmatprep.subr.bf16.mxu0 %v649_v1  ;;  %v54_v4 = vpack.c.bf16 %v53_v3, %v53_v3  ;;  %v652_v5 = vld [vmem:[#allocation5 + $0x84] ss:$8 sps:$4 sm:$0xff]   ;;  %vm79_vm0 = vcmask 130048   ;;  %s810_s0 = smov [#allocation8]  }
  0x27   :  { %v654_v6 = vld [vmem:[#allocation5 + $0x80] ss:$8 sps:$4 sm:$0xff]   ;;  %98 = vmatpush1.bf16.msra.mxu0 %v651_v2  ;;  %v655_v7 = vld [vmem:[#allocation5 + $0x74] ss:$8 sps:$4 sm:$0xff]   ;;  %333 = vmatprep.subr.bf16.mxu1 %v652_v5  ;;  %v657_v8 = vld [vmem:[#allocation5 + $0x70] ss:$8 sps:$4 sm:$0xff]  }
  0x28   :  { %334 = vmatpush1.bf16.msra.mxu1 %v654_v6  ;;  %v658_v9 = vld [vmem:[#allocation5 + $0x64] ss:$8 sps:$4 sm:$0xff]   ;;  %v660_v10 = vld [vmem:[#allocation5 + $0x60] ss:$8 sps:$4 sm:$0xff]   ;;  %v661_v11 = vld [vmem:[#allocation5 + $0x54] ss:$8 sps:$4 sm:$0xff]  }
  0x29   :  { %335 = vmatprep.subr.bf16.mxu1 %v655_v7  ;;  %v663_v12 = vld [vmem:[#allocation5 + $0x50] ss:$8 sps:$4 sm:$0xff]   ;;  %v664_v13 = vld [vmem:[#allocation5 + $0x44] ss:$8 sps:$4 sm:$0xff]   ;;  %v666_v14 = vld [vmem:[#allocation5 + $0x40] ss:$8 sps:$4 sm:$0xff]  }
  0x2a   :  { %571 = vmatmul.mubr.msk.bf16.vlgmr.msra.gmra.mxu0 %vm79_vm0, %v54_v4  ;;  %v667_v15 = vld [vmem:[#allocation5 + $0x34] ss:$8 sps:$4 sm:$0xff]   ;;  %v669_v16 = vld [vmem:[#allocation5 + $0x30] ss:$8 sps:$4 sm:$0xff]   ;;  %v670_v17 = vld [vmem:[#allocation5 + $0x24] ss:$8 sps:$4 sm:$0xff]  }
  0x2b   :  { %v672_v18 = vld [vmem:[#allocation5 + $0x20] ss:$8 sps:$4 sm:$0xff]   ;;  %v673_v19 = vld [vmem:[#allocation5 + $0x14] ss:$8 sps:$4 sm:$0xff]   ;;  %v675_v20 = vld [vmem:[#allocation5 + $0x10] ss:$8 sps:$4 sm:$0xff]  }
  0x2c   :  { %336 = vmatpush1.bf16.msra.mxu1 %v657_v8  ;;  %v676_v21 = vld [vmem:[#allocation5 + $0x104] ss:$8 sps:$4 sm:$0xff]   ;;  %v678_v22 = vld [vmem:[#allocation5 + $0x100] ss:$8 sps:$4 sm:$0xff]   ;;  %v679_v23 = vld [vmem:[#allocation5 + $0xf4] ss:$8 sps:$4 sm:$0xff]  }
  0x2d   :  { %337 = vmatprep.subr.bf16.mxu1 %v658_v9  ;;  %v681_v24 = vld [vmem:[#allocation5 + $0xf0] ss:$8 sps:$4 sm:$0xff]   ;;  %v682_v25 = vld [vmem:[#allocation5 + $0xe4] ss:$8 sps:$4 sm:$0xff]   ;;  %v684_v26 = vld [vmem:[#allocation5 + $0xe0] ss:$8 sps:$4 sm:$0xff]  }
  0x2e   :  { %v685_v27 = vld [vmem:[#allocation5 + $0xd4] ss:$8 sps:$4 sm:$0xff]   ;;  %v687_v28 = vld [vmem:[#allocation5 + $0xd0] ss:$8 sps:$4 sm:$0xff]   ;;  %v688_v29 = vld [vmem:[#allocation5 + $0xc4] ss:$8 sps:$4 sm:$0xff]  }
  0x2f   :  { %v690_v30 = vld [vmem:[#allocation5 + $0xc0] ss:$8 sps:$4 sm:$0xff]   ;;  %v691_v31 = vld [vmem:[#allocation5 + $0xb4] ss:$8 sps:$4 sm:$0xff]   ;;  %v693_v32 = vld [vmem:[#allocation5 + $0xb0] ss:$8 sps:$4 sm:$0xff]  }
  0x30   :  { %338 = vmatpush1.bf16.msra.mxu1 %v660_v10  ;;  %v694_v33 = vld [vmem:[#allocation5 + $0xa4] ss:$8 sps:$4 sm:$0xff]   ;;  %v696_v34 = vld [vmem:[#allocation5 + $0xa0] ss:$8 sps:$4 sm:$0xff]   ;;  %v697_v35 = vld [vmem:[#allocation5 + $0x94] ss:$8 sps:$4 sm:$0xff]  }
  0x31   :  { %339 = vmatprep.subr.bf16.mxu1 %v661_v11  ;;  %v699_v36 = vld [vmem:[#allocation5 + $0x90] ss:$8 sps:$4 sm:$0xff]   ;;  %v700_v37 = vld [vmem:[#allocation5 + $0x200] ss:$8 sps:$4 sm:$0xff]   ;;  %v60_v50 = vshrl.u32 %v59_v49, 7  ;;  %s559_s2 = sshll.u32 %s810_s0, 4  ;;  %s560_s2 = int_to_ptr.vmem [resolvable:$true] %s559_s2 }
  0x32   :  { %v701_v38 = vld [vmem:[#allocation5 + $0x180] ss:$8 sps:$4 sm:$0xff]   ;;  %v702_v39 = vld [vmem:[#allocation5 + $0x1f0] ss:$8 sps:$4 sm:$0xff]   ;;  %620 = vmatprep.subr.bf16.mxu0 %v700_v37  ;;  %s778_s28 = scalar_lea.vmem %s560_s2, 128  ;;  %p783_p2 = scmp.lt.s32.totalorder %s560_s2, %s560_s2 }
  0x33   :  { %621 = vmatpush3.bf16.msra.mxu0 %v701_v38  ;;  %v703_v40 = vld [vmem:[#allocation5 + $0x170] ss:$8 sps:$4 sm:$0xff]   ;;  %v704_v41 = vld [vmem:[#allocation5 + $0x1e0] ss:$8 sps:$4 sm:$0xff]   ;;  %v61_v51 = vsub.s32 0, %v60_v50  ;;  %v65_v53 = vsub.s32 1, %v60_v50  ;;  %p779_p1 = scmp.ne.s32.totalorder %s560_s2, %s778_s28  ;;  %p784_p3 = scmp.lt.s32.totalorder %s778_s28, %s778_s28 }
  0x34   :  { %340 = vmatpush1.bf16.msra.mxu1 %v663_v12  ;;  %622 = vmatprep.subr.bf16.mxu0 %v702_v39  ;;  %v705_v42 = vld [vmem:[#allocation5 + $0x160] ss:$8 sps:$4 sm:$0xff]   ;;  %v706_v43 = vld [vmem:[#allocation5 + $0x1d0] ss:$8 sps:$4 sm:$0xff]  }
  0x35   :  { %341 = vmatprep.subr.bf16.mxu1 %v664_v13  ;;  %v707_v44 = vld [vmem:[#allocation5 + $0x150] ss:$8 sps:$4 sm:$0xff]   ;;  %v708_v45 = vld [vmem:[#allocation5 + $0x1c0] ss:$8 sps:$4 sm:$0xff]   ;;  %p785_p4 = por %p784_p3, %p783_p2 }
  0x36   :  { %v709_v46 = vld [vmem:[#allocation5 + $0x140] ss:$8 sps:$4 sm:$0xff]   ;;  %v710_v47 = vld [vmem:[#allocation5 + $0x1b0] ss:$8 sps:$4 sm:$0xff]  }
  0x37   :  { %623 = vmatpush3.bf16.msra.mxu0 %v703_v40  ;;  %v711_v48 = vld [vmem:[#allocation5 + $0x130] ss:$8 sps:$4 sm:$0xff]   ;;  %v712_v2 = vld [vmem:[#allocation5 + $0x1a0] ss:$8 sps:$4 sm:$0xff]   ;;  %p786_p5 = pnand %p785_p4, %p779_p1 }
  0x38   :  { %342 = vmatpush1.bf16.msra.mxu1 %v666_v14  ;;  %624 = vmatprep.subr.bf16.mxu0 %v704_v41  ;;  %v57_v52 = vld [vmem:[#allocation7] ss:$8 sm:$0x3]  ;;  %v713_v3 = vld [vmem:[#allocation5 + $0x120] ss:$8 sps:$4 sm:$0xff]  }
  0x39   :  { %343 = vmatprep.subr.bf16.mxu1 %v667_v15  ;;  %v62_v54 = vrot.slane %v57_v52, %v61_v51  ;;  %v66_v55 = vrot.slane %v57_v52, %v65_v53  ;;  %v714_v4 = vld [vmem:[#allocation5 + $0x190] ss:$8 sps:$4 sm:$0xff]  }
  0x3a   :  { %v715_v5 = vld [vmem:[#allocation5 + $0x110] ss:$8 sps:$4 sm:$0xff]  }
  0x3b   :  { %625 = vmatpush3.bf16.msra.mxu0 %v705_v42  ;;  %v161_v6 = vld [vmem:[#allocation7 + $0x1] ss:$8 sm:$0x3] }
  0x3c   :  { %344 = vmatpush1.bf16.msra.mxu1 %v669_v16  ;;  %626 = vmatprep.subr.bf16.mxu0 %v706_v43  ;;  %v166_v7 = vrot.slane %v161_v6, %v61_v51  ;;  %v170_v8 = vrot.slane %v161_v6, %v65_v53 }
  0x3d   :  { %345 = vmatprep.subr.bf16.mxu1 %v670_v17 }
  0x3f   :  { %627 = vmatpush3.bf16.msra.mxu0 %v707_v44 }
  0x40   :  { %346 = vmatpush1.bf16.msra.mxu1 %v672_v18  ;;  %628 = vmatprep.subr.bf16.mxu0 %v708_v45 }
  0x41   :  { %347 = vmatprep.subr.bf16.mxu1 %v673_v19 }
  0x43   :  { %629 = vmatpush3.bf16.msra.mxu0 %v709_v46 }
  0x44   :  { %348 = vmatpush1.bf16.msra.mxu1 %v675_v20  ;;  %630 = vmatprep.subr.bf16.mxu0 %v710_v47  ;;  %v410_v20 = vld [vmem:[#allocation7 + $0x2] ss:$0 sm:$0xff] }
  0x45   :  { %349 = vmatprep.subr.bf16.mxu1 %v676_v21 }
  0x47   :  { %631 = vmatpush3.bf16.msra.mxu0 %v711_v48 }
  0x48   :  { %350 = vmatpush2.bf16.msra.mxu1 %v678_v22  ;;  %632 = vmatprep.subr.bf16.mxu0 %v712_v2 }
  0x49   :  { %351 = vmatprep.subr.bf16.mxu1 %v679_v23 }
  0x4b   :  { %633 = vmatpush3.bf16.msra.mxu0 %v713_v3 }
  0x4c   :  { %352 = vmatpush2.bf16.msra.mxu1 %v681_v24  ;;  %634 = vmatprep.subr.bf16.mxu0 %v714_v4 }
  0x4d   :  { %353 = vmatprep.subr.bf16.mxu1 %v682_v25 }
  0x4f   :  { %635 = vmatpush3.bf16.msra.mxu0 %v715_v5 }
  0x50   :  { %354 = vmatpush2.bf16.msra.mxu1 %v684_v26  ;;  %v548_v26 = vand.u32 127, %v59_v49 }
  0x51   :  { %355 = vmatprep.subr.bf16.mxu1 %v685_v27 }
  0x52   :  { %vm549_vm1 = vcmp.eq.s32.totalorder %v548_v26, 0 }
  0x54   :  { %356 = vmatpush2.bf16.msra.mxu1 %v687_v28 }
  0x55   :  { %357 = vmatprep.subr.bf16.mxu1 %v688_v29 }
  0x58   :  { %358 = vmatpush2.bf16.msra.mxu1 %v690_v30 }
  0x59   :  { %359 = vmatprep.subr.bf16.mxu1 %v691_v31 }
  0x5c   :  { %360 = vmatpush2.bf16.msra.mxu1 %v693_v32 }
  0x5d   :  { %361 = vmatprep.subr.bf16.mxu1 %v694_v33 }
  0x60   :  { %362 = vmatpush2.bf16.msra.mxu1 %v696_v34 }
  0x61   :  { %363 = vmatprep.subr.bf16.mxu1 %v697_v35 }
  0x64   :  { %364 = vmatpush2.bf16.msra.mxu1 %v699_v36 }
  0xea   :  { %v117_v56 = vpop.f32.mrf.mxu0 }
  0xeb   :  { %v118_v57 = vadd.f32 %v117_v56, %v62_v54 }
  0xec   :  { %v119_v58 = vpop.f32.mrf.mxu0 }
  0xed   :  { %v120_v59 = vadd.f32 %v119_v58, %v66_v55  ;;  %v124_v60 = vmax.f32 %v118_v57, 0.0 }
  0xee   :  { %v121_v61 = vpop.f32.mrf.mxu0 }
  0xef   :  { %v125_v62 = vmax.f32 %v120_v59, 0.0  ;;  %v126_v1 = vpack.c.bf16 %v124_v60, %v124_v60 }
  0xf0   :  { %v122_v63 = vpop.f32.mrf.mxu0 }
  0xf1   :  { %v127_v0 = vpack.c.bf16 %v125_v62, %v125_v62 }
  0xf3   :  { %365 = vmatprep.mubr.bf16.mxu1 %v127_v0 }
  0xf4   :  { %366 = vmatmul.mubr.bf16.vlgmr.msra.gmra.mxu1 %v126_v1 }
 0x1b4   :  { %v367_v9 = vpop.f32.mrf.mxu1 }
 0x1b5   :  { %v368_v10 = vadd.f32 %v367_v9, %v166_v7 }
 0x1b6   :  { %v369_v11 = vpop.f32.mrf.mxu1 }
 0x1b7   :  { %v370_v12 = vadd.f32 %v369_v11, %v170_v8  ;;  %v374_v13 = vmax.f32 %v368_v10, 0.0 }
 0x1b8   :  { %v371_v14 = vpop.f32.mrf.mxu1 }
 0x1b9   :  { %v375_v15 = vmax.f32 %v370_v12, 0.0  ;;  %v376_v18 = vpack.c.bf16 %v374_v13, %v374_v13 }
 0x1ba   :  { %v372_v16 = vpop.f32.mrf.mxu1 }
 0x1bb   :  { %v377_v17 = vpack.c.bf16 %v375_v15, %v375_v15 }
 0x1bd   :  { %539 = vmatprep.mubr.bf16.mxu0 %v377_v17 }
 0x1be   :  { %540 = vmatmul.mubr.bf16.vlgmr.msra.gmra.mxu0 %v376_v18 }
 0x27e   :  { %v636_v19 = vpop.f32.mrf.mxu0 }
 0x280   :  { %v637_v21 = vpop.f32.mrf.mxu0 }
 0x281   :  { %v638_v22 = vadd.f32 %v637_v21, %v636_v19 }
 0x282   :  { %v639_v23 = vpop.f32.mrf.mxu0 }
 0x283   :  { %v542_v24 = vadd.f32 %v638_v22, %v410_v20 }
 0x284   :  { %v640_v25 = vpop.f32.mrf.mxu0 }
 0x285   :  { %716 = vtanh.f32 %v542_v24 }
 0x292   :  { %v717_v27 = vpop.eup %716 }
 0x293   :  { %v551_v28 = vsel %vm549_vm1, %v717_v27, %v542_v24 }
 0x294   :  { %552 = vst [vmem:[#allocation8] sm:$0xff] %v551_v28 }
 0x295   :  { %789 = shalt.err (!%p786_p5)
}
 0x296   :  { %562 = dma.vmem_to_hbm [thread:$0]  %s560_s2, 128, %s846_s3, [#allocation4]  }
 0x297   :  { %802 = dma.done.wait [#allocation4], 128  }
 0x298   :  { %803 = vsyncadd [#allocation4], 4294967168 }
 0x299   :  { %566 = vsyncpa [#allocation3], 1 }
 0x29a   :  { %567 = vsyncpa [#allocation6], 1 }
 0x29b   :  { %568 = vsyncpa [#allocation4], 1 }

</bundles_post_ra>
